<compile_context>
chip_gen: v6e
topology: v6e:2x2x1
jax: 0.10.0
libtpu: 0.0.40
codegen_flags: <defaults>
</compile_context>

<pallas_src>
import functools
import math

import jax
import jax.numpy as jnp
from jax.experimental import pallas as pl
from jax.experimental.pallas import tpu as pltpu


# Double-buffered block budget. Kept well under the 32 MiB scoped-VMEM default
# that binds on v7x (64 MiB physical), so no vmem_limit_bytes override is
# needed on any generation; v5e/v6e simply keep extra headroom.
_VMEM_BUDGET_BYTES = 20 * 1024 * 1024
_MAX_TILE_LANES = 32768        # primary tuning knob (review: 8192-32768)
_MAX_BATCH_BLOCK = 8           # max batches packed per grid step


def _round_up(x, m):
    return -(-x // m) * m


def _largest_divisor_leq(n, cap):
    cap = max(1, min(n, cap))
    for d in range(cap, 0, -1):
        if n % d == 0:
            return d
    return 1


def _plan_hw_tiling(hw, max_tile_lanes):
    """Pick (t_hw, n_hw, hw_pad): t_hw is a multiple of 128 and
    hw_pad = n_hw * t_hw >= hw with < 128 lanes of padding per tile.
    No full-HW fallback: stores stay lane-dense and VMEM stays bounded."""
    max_tile_lanes = max(128, (max_tile_lanes // 128) * 128)
    hw128 = _round_up(hw, 128)
    if hw128 <= max_tile_lanes:
        return hw128, 1, hw128
    n_hw = math.ceil(hw / max_tile_lanes)
    t_hw = _round_up(math.ceil(hw / n_hw), 128)
    return t_hw, n_hw, t_hw * n_hw


# ---------------------------------------------------------------------------
# Path A: block-diagonal dense matmul (memory-bound regime, the common case).
# ---------------------------------------------------------------------------
def _dense_kernel(x_ref, w_ref, b_ref, o_ref):
    # x_ref: (Bt, C_in, t_hw)   lane-dense spatial, sublane-dense channels
    # w_ref: (C_out, C_in)      block-diagonal grouped weight (resident)
    # b_ref: (C_out, 1)         f32
    # o_ref: (Bt, C_out, t_hw)  lane-dense output block
    w = w_ref[...]
    b = b_ref[...]
    for i in range(x_ref.shape[0]):      # static unroll over packed batches
        acc = jnp.dot(w, x_ref[i], preferred_element_type=jnp.float32) + b
        o_ref[i] = acc.astype(o_ref.dtype)


def _dense_path(xf, weight, bias_f32, groups, out_w, out_dtype, max_tile_lanes):
    B, C_in, HW = xf.shape
    C_out = groups * out_w

    # Block-diagonal (C_out, C_in) weight; row/col order matches torch.cat(dim=1).
    eye_g = jnp.eye(groups, dtype=weight.dtype)
    w_bd = jnp.einsum("goi,gh->gohi", weight, eye_g).reshape(C_out, C_in)
    b_bd = bias_f32.reshape(C_out, 1)

    # --- VMEM-budgeted batch packing + lane tile ---------------------------
    itemsize = max(jnp.dtype(xf.dtype).itemsize, jnp.dtype(out_dtype).itemsize)
    fixed = 2 * C_out * C_in * jnp.dtype(w_bd.dtype).itemsize + 2 * 4 * C_out
    budget = max(256 * 1024, _VMEM_BUDGET_BYTES - fixed)
    per_lane = 2 * itemsize * (C_in + C_out)       # in + out, double-buffered
    hw128 = _round_up(HW, 128)

    bt_fill = max(1, max_tile_lanes // hw128)      # fill ~max_tile lanes/step
    bt_budget = max(1, budget // (per_lane * min(hw128, max_tile_lanes)))
    Bt = _largest_divisor_leq(B, min(_MAX_BATCH_BLOCK, bt_fill, bt_budget))

    cap_lanes = max(128, (budget // (per_lane * Bt) // 128) * 128)
    t_hw, n_hw, hw_pad = _plan_hw_tiling(HW, min(max_tile_lanes, cap_lanes))

    if hw_pad != HW:
        xf = jnp.pad(xf, ((0, 0), (0, 0), (0, hw_pad - HW)))

    nb = B // Bt
    # Larger parallel axis outermost -> balanced 2-TensorCore split on v7x.
    if n_hw >= nb:
        grid = (n_hw, nb)
        blk_map = lambda m, b: (b, 0, m)
        const_map = lambda m, b: (0, 0)
    else:
        grid = (nb, n_hw)
        blk_map = lambda b, m: (b, 0, m)
        const_map = lambda b, m: (0, 0)

    cost = pl.CostEstimate(
        flops=2 * B * C_out * C_in * HW,
        transcendentals=0,
        bytes_accessed=(jnp.dtype(xf.dtype).itemsize * B * C_in * HW
                        + jnp.dtype(out_dtype).itemsize * B * C_out * HW
                        + jnp.dtype(w_bd.dtype).itemsize * C_out * C_in
                        + 4 * C_out))

    out = pl.pallas_call(
        _dense_kernel,
        out_shape=jax.ShapeDtypeStruct((B, C_out, hw_pad), out_dtype),
        grid_spec=pltpu.PrefetchScalarGridSpec(
            num_scalar_prefetch=0,
            grid=grid,
            in_specs=[
                pl.BlockSpec((Bt, C_in, t_hw), blk_map),
                pl.BlockSpec((C_out, C_in), const_map),
                pl.BlockSpec((C_out, 1), const_map),
            ],
            out_specs=pl.BlockSpec((Bt, C_out, t_hw), blk_map),
        ),
        compiler_params=pltpu.CompilerParams(
            dimension_semantics=("parallel", "parallel")),
        cost_estimate=cost,
    )(xf, w_bd, b_bd)

    if hw_pad != HW:
        out = out[:, :, :HW]
    return out                                        # (B, C_out, HW)


# ---------------------------------------------------------------------------
# Path B: one group per step (used when per-group channels are large enough
# that the block-diagonal trick would leave the HBM-bound regime).
# ---------------------------------------------------------------------------
def _grouped_kernel(x_ref, w_ref, b_ref, o_ref):
    # x_ref: (1, 1, in_w, t_hw); w_ref: (1, out_w, in_w); b_ref: (1, out_w, 1)
    acc = jnp.dot(w_ref[0], x_ref[0, 0], preferred_element_type=jnp.float32)
    o_ref[0, 0] = (acc + b_ref[0]).astype(o_ref.dtype)


def _grouped_path(xg, weight, bias_f32, out_dtype, max_tile_lanes):
    B, groups, in_w, HW = xg.shape
    out_w = weight.shape[1]

    itemsize = max(jnp.dtype(xg.dtype).itemsize, jnp.dtype(out_dtype).itemsize)
    fixed = 2 * out_w * in_w * jnp.dtype(weight.dtype).itemsize + 2 * 4 * out_w
    budget = max(256 * 1024, _VMEM_BUDGET_BYTES - fixed)
    per_lane = 2 * itemsize * (in_w + out_w)
    cap_lanes = max(128, (budget // per_lane // 128) * 128)
    # TODO(synk): add an in_w (K) grid axis with a pl.when-managed f32 VMEM
    # accumulator for very large per-group channels (v5e wants 128-wide MXU
    # tiles); full-in_w contraction per block is fine at this module's sizes.
    t_hw, n_hw, hw_pad = _plan_hw_tiling(HW, min(max_tile_lanes, cap_lanes))

    if hw_pad != HW:
        xg = jnp.pad(xg, ((0, 0), (0, 0), (0, 0), (0, hw_pad - HW)))

    cost = pl.CostEstimate(
        flops=2 * B * groups * out_w * in_w * HW,
        transcendentals=0,
        bytes_accessed=(jnp.dtype(xg.dtype).itemsize * B * groups * in_w * HW
                        + jnp.dtype(out_dtype).itemsize * B * groups * out_w * HW
                        + jnp.dtype(weight.dtype).itemsize * groups * out_w * in_w
                        + 4 * groups * out_w))

    out = pl.pallas_call(
        _grouped_kernel,
        out_shape=jax.ShapeDtypeStruct((B, groups, out_w, hw_pad), out_dtype),
        grid_spec=pltpu.PrefetchScalarGridSpec(
            num_scalar_prefetch=0,
            # HW-tile axis innermost keeps each group's weight/bias resident.
            grid=(groups, B, n_hw),
            in_specs=[
                pl.BlockSpec((1, 1, in_w, t_hw), lambda g, b, m: (b, g, 0, m)),
                pl.BlockSpec((1, out_w, in_w), lambda g, b, m: (g, 0, 0)),
                pl.BlockSpec((1, out_w, 1), lambda g, b, m: (g, 0, 0)),
            ],
            out_specs=pl.BlockSpec((1, 1, out_w, t_hw),
                                   lambda g, b, m: (b, g, 0, m)),
        ),
        compiler_params=pltpu.CompilerParams(
            dimension_semantics=("parallel", "parallel", "parallel")),
        cost_estimate=cost,
    )(xg, weight, bias_f32)

    if hw_pad != HW:
        out = out[:, :, :, :HW]
    return out                                        # (B, groups, out_w, HW)


# ---------------------------------------------------------------------------
# Public wrapper
# ---------------------------------------------------------------------------
@functools.partial(jax.jit, static_argnames=("groups", "max_tile_lanes", "io_dtype"))
def sparse_forward(x, weight, bias, *, groups, max_tile_lanes=_MAX_TILE_LANES,
                   io_dtype=None):
    """Forward of the `Sparse` module (cat=True): groups independent 1x1 convs.

    x:      (B, C_in, H, W)         NCHW
    weight: (groups, out_w, in_w)   per-group dense weight
    bias:   (groups, out_w, 1)
    io_dtype: optional narrower dtype (e.g. jnp.bfloat16) for x / weight HBM
              traffic when memory-bound; accumulation stays f32 and the output
              keeps x.dtype.
    returns (B, groups * out_w, H, W)
    """
    B, C, H, W = x.shape
    assert C % groups == 0, "in_channels must be divisible by groups"
    in_w = C // groups
    assert weight.ndim == 3 and weight.shape[0] == groups and weight.shape[2] == in_w, \
        f"weight must be (groups, out_w, {in_w}), got {weight.shape}"
    out_w = weight.shape[1]
    assert bias.shape == (groups, out_w, 1), \
        f"bias must be {(groups, out_w, 1)}, got {bias.shape}"

    C_out = groups * out_w
    HW = H * W
    out_dtype = x.dtype
    max_tile_lanes = max(128, int(max_tile_lanes))

    if io_dtype is not None:
        x = x.astype(io_dtype)
        weight = weight.astype(io_dtype)
    bias_f32 = bias.astype(jnp.float32)   # bias added post-MXU in f32

    # Path choice: fold groups into one block-diagonal (C_out, C_in) matmul
    # while it stays HBM-bound (its extra FLOPs hide under the DMA); otherwise
    # keep one group per grid step.
    dense_flops_per_byte = 2.0 * C_out * C / (4.0 * (C + C_out))
    use_dense = (groups == 1) or (dense_flops_per_byte <= 128.0)

    if use_dense:
        out = _dense_path(x.reshape(B, C, HW), weight, bias_f32, groups, out_w,
                          out_dtype, max_tile_lanes)           # (B, C_out, HW)
    else:
        out = _grouped_path(x.reshape(B, groups, in_w, HW), weight, bias_f32,
                            out_dtype, max_tile_lanes)         # (B, G, out_w, HW)
        out = out.reshape(B, C_out, HW)

    # Free reshape back to NCHW; identical to torch.cat(out, dim=1).
    return out.reshape(B, C_out, H, W)


# ---------------------------------------------------------------------------
# Init + pure-JAX reference (validation only)
# ---------------------------------------------------------------------------
def init_params(key, in_channels, out_channels, groups):
    """Mirror the module's init: kaiming_normal_(fan_out, relu) per conv weight
    (torch shape (out_w, in_w, 1, 1)), Conv2d-default uniform bias."""
    in_w = in_channels // groups
    out_w = out_channels // groups
    kw, kb = jax.random.split(key)
    std = jnp.sqrt(2.0 / out_w)               # fan_out = out_w * 1 * 1
    weight = std * jax.random.normal(kw, (groups, out_w, in_w), jnp.float32)
    bound = 1.0 / jnp.sqrt(in_w)
    bias = jax.random.uniform(kb, (groups, out_w, 1), jnp.float32,
                              minval=-bound, maxval=bound)
    return weight, bias


def reference_forward(x, weight, bias, groups):
    """Pure-JAX reference (chunk -> 1x1 conv -> concat)."""
    B, C, H, W = x.shape
    in_w = C // groups
    outs = []
    for g in range(groups):
        xg = x[:, g * in_w:(g + 1) * in_w]                   # (B, in_w, H, W)
        og = jnp.einsum('bihw,oi->bohw', xg, weight[g],
                        precision=jax.lax.Precision.HIGHEST)
        og = og + bias[g, :, 0][None, :, None, None]
        outs.append(og)
    return jnp.concatenate(outs, axis=1)


if __name__ == "__main__":
    key = jax.random.PRNGKey(0)
    k1, k2, k3, k4, k5, k6 = jax.random.split(key, 6)

    # Test 1: module-like shapes (batch=2, channels=8, 16x16, groups=2) - dense path.
    B, C_in, C_out, H, W, G = 2, 8, 8, 16, 16, 2
    x = jax.random.normal(k1, (B, C_in, H, W), jnp.float32)
    weight, bias = init_params(k2, C_in, C_out, G)
    out = jax.block_until_ready(sparse_forward(x, weight, bias, groups=G))
    ref = reference_forward(x, weight, bias, G)
    assert out.shape == (B, C_out, H, W)
    assert jnp.allclose(out, ref, atol=1e-5, rtol=1e-5)

    # Test 2: non-128-divisible spatial extent exercises the lane-padding path.
    B2, C2_in, C2_out, H2, W2, G2 = 2, 4, 6, 5, 5, 2
    x2 = jax.random.normal(k3, (B2, C2_in, H2, W2), jnp.float32)
    w2, b2 = init_params(k4, C2_in, C2_out, G2)
    out2 = jax.block_until_ready(sparse_forward(x2, w2, b2, groups=G2))
    ref2 = reference_forward(x2, w2, b2, G2)
    assert out2.shape == (B2, C2_out, H2, W2)
    assert jnp.allclose(out2, ref2, atol=1e-5, rtol=1e-5)

    # Test 3: large per-group channels -> grouped (non-block-diagonal) path.
    B3, C3, H3, W3, G3 = 1, 1024, 8, 8, 4
    x3 = jax.random.normal(k5, (B3, C3, H3, W3), jnp.float32)
    w3, b3 = init_params(k6, C3, C3, G3)
    out3 = jax.block_until_ready(sparse_forward(x3, w3, b3, groups=G3))
    ref3 = reference_forward(x3, w3, b3, G3)
    assert out3.shape == (B3, C3, H3, W3)
    assert jnp.allclose(out3, ref3, atol=5e-4, rtol=5e-4)

    print("KERNEL_OK")
</pallas_src>

<mosaic_0001>
module attributes {stable_mosaic.version = 11 : i64} {
  func.func @_dense_kernel(%arg0: i32, %arg1: i32, %arg2: memref<2x8x256xf32, #tpu.memory_space<vmem>>, %arg3: memref<8x8xf32, #tpu.memory_space<vmem>>, %arg4: memref<8x1xf32, #tpu.memory_space<vmem>>, %arg5: memref<2x8x256xf32, #tpu.memory_space<vmem>>) attributes {dimension_semantics = [#tpu.dimension_semantics<parallel>, #tpu.dimension_semantics<parallel>], iteration_bounds = array<i64: 1, 1>, scalar_prefetch = 0 : i64, scratch_operands = 0 : i64, tpu.core_type = #tpu.core_type<tc>, window_params = [{transform_indices = @transform_0, window_bounds = array<i64: 2, 8, 256>}, {pipeline_mode = #tpu.pipeline_mode<synchronous>, transform_indices = @transform_1, window_bounds = array<i64: 8, 8>}, {pipeline_mode = #tpu.pipeline_mode<synchronous>, transform_indices = @transform_2, window_bounds = array<i64: 8, 1>}, {transform_indices = @transform_3, window_bounds = array<i64: 2, 8, 256>}]} {
    %c0 = arith.constant 0 : index
    %c0_0 = arith.constant 0 : index
    %0 = vector.load %arg3[%c0, %c0_0] : memref<8x8xf32, #tpu.memory_space<vmem>>, vector<8x8xf32>
    %c0_1 = arith.constant 0 : index
    %c0_2 = arith.constant 0 : index
    %1 = vector.load %arg4[%c0_1, %c0_2] : memref<8x1xf32, #tpu.memory_space<vmem>>, vector<8x1xf32>
    %c0_3 = arith.constant 0 : index
    %c0_4 = arith.constant 0 : index
    %c0_5 = arith.constant 0 : index
    %2 = vector.load %arg2[%c0_3, %c0_4, %c0_5] : memref<2x8x256xf32, #tpu.memory_space<vmem>>, vector<1x8x256xf32>
    %3 = vector.shape_cast %2 : vector<1x8x256xf32> to vector<8x256xf32>
    %cst = arith.constant dense<0.000000e+00> : vector<8x256xf32>
    %4 = tpu.matmul %0, %3, %cst {dimension_numbers = #tpu.dot_dimension_numbers<[1], [0], [0], [1], [0, 0, 1, 1], [], []>} : vector<8x8xf32>, vector<8x256xf32>, vector<8x256xf32> -> vector<8x256xf32>
    %5 = vector.broadcast %1 : vector<8x1xf32> to vector<8x256xf32>
    %6 = arith.addf %4, %5 : vector<8x256xf32>
    %c0_6 = arith.constant 0 : index
    %c0_7 = arith.constant 0 : index
    %c0_8 = arith.constant 0 : index
    %7 = vector.load %arg5[%c0_6, %c0_7, %c0_8] : memref<2x8x256xf32, #tpu.memory_space<vmem>>, vector<1x8x256xf32>
    %8 = vector.shape_cast %7 : vector<1x8x256xf32> to vector<8x256xf32>
    %9 = vector.shape_cast %6 : vector<8x256xf32> to vector<1x8x256xf32>
    tpu.vector_store %arg5[%c0_6, %c0_7, %c0_8], %9 {strides = array<i32>} : memref<2x8x256xf32, #tpu.memory_space<vmem>>, vector<1x8x256xf32>,
    %c1 = arith.constant 1 : index
    %c0_9 = arith.constant 0 : index
    %c0_10 = arith.constant 0 : index
    %10 = vector.load %arg2[%c1, %c0_9, %c0_10] : memref<2x8x256xf32, #tpu.memory_space<vmem>>, vector<1x8x256xf32>
    %11 = vector.shape_cast %10 : vector<1x8x256xf32> to vector<8x256xf32>
    %cst_11 = arith.constant dense<0.000000e+00> : vector<8x256xf32>
    %12 = tpu.matmul %0, %11, %cst_11 {dimension_numbers = #tpu.dot_dimension_numbers<[1], [0], [0], [1], [0, 0, 1, 1], [], []>} : vector<8x8xf32>, vector<8x256xf32>, vector<8x256xf32> -> vector<8x256xf32>
    %13 = vector.broadcast %1 : vector<8x1xf32> to vector<8x256xf32>
    %14 = arith.addf %12, %13 : vector<8x256xf32>
    %c1_12 = arith.constant 1 : index
    %c0_13 = arith.constant 0 : index
    %c0_14 = arith.constant 0 : index
    %15 = vector.load %arg5[%c1_12, %c0_13, %c0_14] : memref<2x8x256xf32, #tpu.memory_space<vmem>>, vector<1x8x256xf32>
    %16 = vector.shape_cast %15 : vector<1x8x256xf32> to vector<8x256xf32>
    %17 = vector.shape_cast %14 : vector<8x256xf32> to vector<1x8x256xf32>
    tpu.vector_store %arg5[%c1_12, %c0_13, %c0_14], %17 {strides = array<i32>} : memref<2x8x256xf32, #tpu.memory_space<vmem>>, vector<1x8x256xf32>,
    return
  }
  func.func @transform_0(%arg0: i32, %arg1: i32) -> (i32, i32, i32) {
    %c0_i32 = arith.constant 0 : i32
    %c0_i32_0 = arith.constant 0 : i32
    return %arg1, %c0_i32, %arg0 : i32, i32, i32
  }
  func.func @transform_1(%arg0: i32, %arg1: i32) -> (i32, i32) {
    %c0_i32 = arith.constant 0 : i32
    %c0_i32_0 = arith.constant 0 : i32
    %c0_i32_1 = arith.constant 0 : i32
    return %c0_i32, %c0_i32_0 : i32, i32
  }
  func.func @transform_2(%arg0: i32, %arg1: i32) -> (i32, i32) {
    %c0_i32 = arith.constant 0 : i32
    %c0_i32_0 = arith.constant 0 : i32
    %c0_i32_1 = arith.constant 0 : i32
    return %c0_i32, %c0_i32_0 : i32, i32
  }
  func.func @transform_3(%arg0: i32, %arg1: i32) -> (i32, i32, i32) {
    %c0_i32 = arith.constant 0 : i32
    %c0_i32_0 = arith.constant 0 : i32
    return %arg1, %c0_i32, %arg0 : i32, i32, i32
  }
}

</mosaic_0001>

<bundles_post_ra>
// kernel: sparse_forward.1
= control target key start
LH: loop header
LB: loop body
LE: loop exit
PB: predicated region body
PF: predicated region fallthrough
CT: control target
= control target key end

     0   :  { %v190_v3 = vmov 0.0   ;;  %vm23_vm0 = vcmask 64512   ;;  %v191_v7 = vmov 0   ;;  %s242_s0 = inlined_call_operand.vmem [shape: f32[2,8,256], index: 0, kind: input, shape index: {}]   ;;  %s243_s1 = inlined_call_operand.vmem [shape: f32[8,8], index: 1, kind: input, shape index: {}]   ;;  %s244_s2 = inlined_call_operand.vmem [shape: f32[8,1], index: 2, kind: input, shape index: {}]   ;;  %s245_s3 = inlined_call_operand.vmem [shape: f32[2,8,256], index: 3, kind: output, shape index: {}]  }
   0x1   :  { %v17_v0 = vld [vmem:[%s242_s0 + $0x8] sm:$0xff]  ;;  %v183_v1 = vld [vmem:[%s242_s0 + $0x18] sm:$0xff]  ;;  %v16_v2 = vld [vmem:[%s242_s0] sm:$0xff]  ;;  %91 = vmatprep.mubr.f32.mxu0 %v190_v3  ;;  %167 = vmatprep.mubr.f32.mxu1 %v190_v3 }
   0x2   :  { %57 = vmatprep.subr.mxu0 %v17_v0  ;;  %133 = vmatprep.subr.mxu1 %v183_v1  ;;  %v182_v4 = vld [vmem:[%s242_s0 + $0x10] sm:$0xff]  ;;  %v14_v5 = vld [vmem:[%s243_s1] sm:$0xff] }
   0x3   :  { %58 = vmatpush1.msra.mxu0 %v16_v2  ;;  %134 = vmatpush1.msra.mxu1 %v182_v4  ;;  %v15_v6 = vld [vmem:[%s244_s2] sm:$0xff] }
   0x4   :  { %181 = vmatmul.mubr.msk.f32.vlgmr.msra.gmra.mxu0 %vm23_vm0, %v14_v5  ;;  %184 = vmatmul.mubr.msk.f32.vlgmr.msra.gmra.mxu1 %vm23_vm0, %v14_v5 }
   0x5   :  { %189 = vset.pattern.permute.xlu0 %v191_v7 }
   0x6   :  { %20 = vperm.xlu0 %189, %v15_v6  }
  0x81   :  { %v21_v8 = vpop.permute.xlu0 %20 }
  0xc4   :  { %v93_v9 = vpop.f32.mrf.mxu0  ;;  %v169_v10 = vpop.f32.mrf.mxu1 }
  0xc5   :  { %v94_v11 = vadd.f32 %v93_v9, %v21_v8  ;;  %v170_v12 = vadd.f32 %v169_v10, %v21_v8 }
  0xc6   :  { %v95_v13 = vpop.f32.mrf.mxu0  ;;  %v171_v14 = vpop.f32.mrf.mxu1 }
  0xc7   :  { %98 = vst [vmem:[%s245_s3] sm:$0xff] %v94_v11  ;;  %185 = vst [vmem:[%s245_s3 + $0x10] sm:$0xff] %v170_v12  ;;  %v96_v15 = vadd.f32 %v95_v13, %v21_v8  ;;  %v172_v16 = vadd.f32 %v171_v14, %v21_v8 }
  0xc9   :  { %99 = vst [vmem:[%s245_s3 + $0x8] sm:$0xff] %v96_v15  ;;  %186 = vst [vmem:[%s245_s3 + $0x18] sm:$0xff] %v172_v16 }

</bundles_post_ra>
